<compile_context>
chip_gen: v7x
topology: tpu7x:2x2x1
jax: 0.10.0
libtpu: 0.0.40
codegen_flags: <defaults>
</compile_context>

<pallas_src>
import jax
import jax.numpy as jnp
from jax.experimental import pallas as pl
from jax.experimental.pallas import tpu as pltpu

LANE = 128
ALIGN = 16            # sublane alignment that is safe for both f32 (8) and bf16 (16) blocks
MAX_BLOCK_ROWS = 2048  # (2048,128) f32 = 1 MiB/block; 2 inputs x 2 buffers = 4 MiB VMEM
NCORES = 2             # leading "parallel" grid axis -> both TensorCores on v7x


def _round_up(x, m):
    return ((x + m - 1) // m) * m


def _dice_bce_partial_kernel(x_ref, t_ref, o_ref, acc_ref):
    # acc_ref: VMEM f32[4, 8, 128] -> [0]=sum(p*t), [1]=sum(p), [2]=sum(t), [3]=sum(bce)
    s = pl.program_id(1)

    @pl.when(s == 0)
    def _():
        acc_ref[...] = jnp.zeros_like(acc_ref)

    x = x_ref[...].astype(jnp.float32)
    t = t_ref[...].astype(jnp.float32)

    # Numerically-stable log-sigmoid pieces (single exp + log1p on the EUP).
    e = jnp.exp(-jnp.abs(x))
    softplus = jnp.log1p(e)                       # log(1 + exp(-|x|))
    log_p = jnp.minimum(x, 0.0) - softplus        # log sigmoid(x)
    log_1mp = jnp.minimum(-x, 0.0) - softplus     # log sigmoid(-x) = log(1 - p)
    # torch F.binary_cross_entropy clamps log terms at -100.
    log_p = jnp.maximum(log_p, -100.0)
    log_1mp = jnp.maximum(log_1mp, -100.0)
    bce = -(t * log_p + (1.0 - t) * log_1mp)
    p = jnp.where(x >= 0.0, 1.0, e) / (1.0 + e)   # sigmoid(x)

    rows = x.shape[0]

    def fold(v):  # (rows,128) -> (8,128) via across-vreg VPU adds only
        return jnp.sum(v.reshape(rows // 8, 8, LANE), axis=0)

    acc_ref[0] += fold(p * t)
    acc_ref[1] += fold(p)
    acc_ref[2] += fold(t)
    acc_ref[3] += fold(bce)

    @pl.when(s == pl.num_programs(1) - 1)
    def _():
        o_ref[0] = acc_ref[...]


def dice_bce_loss(inputs, targets, smooth=0.001):
    """inputs: raw logits, any shape (e.g. NCHW). targets: same shape, values in {0,1}."""
    if not jnp.issubdtype(inputs.dtype, jnp.floating):
        inputs = inputs.astype(jnp.float32)
    if targets.dtype != inputs.dtype:
        targets = targets.astype(inputs.dtype)   # {0,1} exact in bf16/f32

    n = inputs.size
    rows = pl.cdiv(n, LANE)
    block_rows = min(MAX_BLOCK_ROWS, _round_up(pl.cdiv(rows, NCORES), ALIGN))
    padded_rows = _round_up(rows, NCORES * block_rows)
    steps = padded_rows // (NCORES * block_rows)
    n_pad = padded_rows * LANE

    x = inputs.reshape(-1)
    t = targets.reshape(-1)
    if n_pad != n:
        # Pad logits very negative: sigmoid(pad)=0, target pad=0 -> every partial sum
        # (p*t, p, t, clamped BCE) gets exactly 0 from padded elements; no in-kernel mask.
        x = jnp.concatenate([x, jnp.full((n_pad - n,), -1e30, dtype=x.dtype)])
        t = jnp.concatenate([t, jnp.zeros((n_pad - n,), dtype=t.dtype)])
    x = x.reshape(padded_rows, LANE)
    t = t.reshape(padded_rows, LANE)

    partials = pl.pallas_call(
        _dice_bce_partial_kernel,
        out_shape=jax.ShapeDtypeStruct((NCORES, 4, 8, LANE), jnp.float32),
        grid_spec=pltpu.PrefetchScalarGridSpec(
            num_scalar_prefetch=0,
            grid=(NCORES, steps),
            in_specs=[
                pl.BlockSpec((block_rows, LANE), lambda c, s: (c * steps + s, 0)),
                pl.BlockSpec((block_rows, LANE), lambda c, s: (c * steps + s, 0)),
            ],
            out_specs=pl.BlockSpec((1, 4, 8, LANE), lambda c, s: (c, 0, 0, 0)),
            scratch_shapes=[pltpu.VMEM((4, 8, LANE), jnp.float32)],
        ),
        compiler_params=pltpu.CompilerParams(
            dimension_semantics=("parallel", "arbitrary")),
    )(x, t)

    sums = jnp.sum(partials, axis=(0, 2, 3))      # (4,) : tiny final combine in XLA
    inter, sum_p, sum_t, sum_bce = sums[0], sums[1], sums[2], sums[3]
    dice_loss = 1.0 - (2.0 * inter + smooth) / (sum_p + sum_t + smooth)
    bce_mean = sum_bce / float(n)
    return bce_mean + dice_loss


def _reference(inputs, targets, smooth=0.001):
    # torch-parity reference: sigmoid + BCE with log clamp at -100, mean reduction.
    p = jax.nn.sigmoid(inputs.astype(jnp.float32)).reshape(-1)
    t = targets.reshape(-1).astype(jnp.float32)
    inter = jnp.sum(p * t)
    dice = 1.0 - (2.0 * inter + smooth) / (jnp.sum(p) + jnp.sum(t) + smooth)
    bce = jnp.mean(-(t * jnp.maximum(jnp.log(p), -100.0)
                     + (1.0 - t) * jnp.maximum(jnp.log(1.0 - p), -100.0)))
    return bce + dice


if __name__ == "__main__":
    key = jax.random.PRNGKey(0)
    k1, k2 = jax.random.split(key)
    B, C, H, W = 2, 4, 16, 16  # NCHW, like the PyTorch module's usage
    logits = jax.random.normal(k1, (B, C, H, W), dtype=jnp.float32) * 2.0
    targets = (jax.random.uniform(k2, (B, C, H, W)) > 0.5).astype(jnp.float32)

    loss = dice_bce_loss(logits, targets)
    jax.block_until_ready(loss)

    ref = _reference(logits, targets)
    assert jnp.allclose(loss, ref, atol=1e-4, rtol=1e-4), (loss, ref)
    print("KERNEL_OK")
</pallas_src>

<mosaic_0001>
module attributes {stable_mosaic.version = 11 : i64} {
  func.func @_dice_bce_partial_kernel(%arg0: i32, %arg1: i32, %arg2: memref<16x128xf32, #tpu.memory_space<vmem>>, %arg3: memref<16x128xf32, #tpu.memory_space<vmem>>, %arg4: memref<1x4x8x128xf32, #tpu.memory_space<vmem>>, %arg5: memref<4x8x128xf32, #tpu.memory_space<vmem>>) attributes {dimension_semantics = [#tpu.dimension_semantics<parallel>, #tpu.dimension_semantics<arbitrary>], iteration_bounds = array<i64: 2, 1>, scalar_prefetch = 0 : i64, scratch_operands = 1 : i64, tpu.core_type = #tpu.core_type<tc>, window_params = [{transform_indices = @transform_0, window_bounds = array<i64: 16, 128>}, {transform_indices = @transform_1, window_bounds = array<i64: 16, 128>}, {transform_indices = @transform_2, window_bounds = array<i64: 1, 4, 8, 128>}]} {
    %c0_i32 = arith.constant 0 : i32
    %0 = arith.cmpi eq, %arg1, %c0_i32 : i32
    %1 = arith.extui %0 : i1 to i32
    %c0_i32_0 = arith.constant 0 : i32
    %2 = arith.cmpi ne, %1, %c0_i32_0 : i32
    scf.if %2 {
      %cst_41 = arith.constant 0.000000e+00 : f32
      %72 = vector.broadcast %cst_41 : f32 to vector<4x8x128xf32>
      %c0_42 = arith.constant 0 : index
      %c0_43 = arith.constant 0 : index
      %c0_44 = arith.constant 0 : index
      %73 = vector.load %arg5[%c0_42, %c0_43, %c0_44] : memref<4x8x128xf32, #tpu.memory_space<vmem>>, vector<4x8x128xf32>
      tpu.vector_store %arg5[%c0_42, %c0_43, %c0_44], %72 {strides = array<i32>} : memref<4x8x128xf32, #tpu.memory_space<vmem>>, vector<4x8x128xf32>,
    } else {
    }
    %c0 = arith.constant 0 : index
    %c0_1 = arith.constant 0 : index
    %3 = vector.load %arg2[%c0, %c0_1] : memref<16x128xf32, #tpu.memory_space<vmem>>, vector<16x128xf32>
    %c0_2 = arith.constant 0 : index
    %c0_3 = arith.constant 0 : index
    %4 = vector.load %arg3[%c0_2, %c0_3] : memref<16x128xf32, #tpu.memory_space<vmem>>, vector<16x128xf32>
    %5 = math.absf %3 : vector<16x128xf32>
    %cst = arith.constant 0.000000e+00 : f32
    %6 = vector.broadcast %cst : f32 to vector<16x128xf32>
    %7 = arith.subf %6, %5 : vector<16x128xf32>
    %8 = math.exp %7 : vector<16x128xf32>
    %9 = math.log1p %8 : vector<16x128xf32>
    %cst_4 = arith.constant 0.000000e+00 : f32
    %10 = vector.broadcast %cst_4 : f32 to vector<16x128xf32>
    %11 = arith.minimumf %3, %10 : vector<16x128xf32>
    %12 = arith.subf %11, %9 : vector<16x128xf32>
    %cst_5 = arith.constant 0.000000e+00 : f32
    %13 = vector.broadcast %cst_5 : f32 to vector<16x128xf32>
    %14 = arith.subf %13, %3 : vector<16x128xf32>
    %cst_6 = arith.constant 0.000000e+00 : f32
    %15 = vector.broadcast %cst_6 : f32 to vector<16x128xf32>
    %16 = arith.minimumf %14, %15 : vector<16x128xf32>
    %17 = arith.subf %16, %9 : vector<16x128xf32>
    %cst_7 = arith.constant -1.000000e+02 : f32
    %18 = vector.broadcast %cst_7 : f32 to vector<16x128xf32>
    %19 = arith.maximumf %12, %18 : vector<16x128xf32>
    %cst_8 = arith.constant -1.000000e+02 : f32
    %20 = vector.broadcast %cst_8 : f32 to vector<16x128xf32>
    %21 = arith.maximumf %17, %20 : vector<16x128xf32>
    %22 = arith.mulf %4, %19 : vector<16x128xf32>
    %cst_9 = arith.constant 1.000000e+00 : f32
    %23 = vector.broadcast %cst_9 : f32 to vector<16x128xf32>
    %24 = arith.subf %23, %4 : vector<16x128xf32>
    %25 = arith.mulf %24, %21 : vector<16x128xf32>
    %26 = arith.addf %22, %25 : vector<16x128xf32>
    %cst_10 = arith.constant 0.000000e+00 : f32
    %27 = vector.broadcast %cst_10 : f32 to vector<16x128xf32>
    %28 = arith.subf %27, %26 : vector<16x128xf32>
    %cst_11 = arith.constant 0.000000e+00 : f32
    %29 = vector.broadcast %cst_11 : f32 to vector<16x128xf32>
    %30 = arith.cmpf oge, %3, %29 : vector<16x128xf32>
    %cst_12 = arith.constant 1.000000e+00 : f32
    %31 = vector.broadcast %cst_12 : f32 to vector<16x128xf32>
    %32 = arith.select %30, %31, %8 : vector<16x128xi1>, vector<16x128xf32>
    %cst_13 = arith.constant 1.000000e+00 : f32
    %33 = vector.broadcast %cst_13 : f32 to vector<16x128xf32>
    %34 = arith.addf %33, %8 : vector<16x128xf32>
    %35 = arith.divf %32, %34 : vector<16x128xf32>
    %c0_14 = arith.constant 0 : index
    %c0_15 = arith.constant 0 : index
    %c0_16 = arith.constant 0 : index
    %36 = vector.load %arg5[%c0_14, %c0_15, %c0_16] : memref<4x8x128xf32, #tpu.memory_space<vmem>>, vector<1x8x128xf32>
    %37 = vector.shape_cast %36 : vector<1x8x128xf32> to vector<8x128xf32>
    %38 = arith.mulf %35, %4 : vector<16x128xf32>
    %39 = vector.shape_cast %38 : vector<16x128xf32> to vector<2x8x128xf32>
    %cst_17 = arith.constant dense<0.000000e+00> : vector<8x128xf32>
    %40 = vector.multi_reduction <add>, %39, %cst_17 [0] : vector<2x8x128xf32> to vector<8x128xf32>
    %41 = arith.addf %37, %40 : vector<8x128xf32>
    %c0_18 = arith.constant 0 : index
    %c0_19 = arith.constant 0 : index
    %c0_20 = arith.constant 0 : index
    %42 = vector.load %arg5[%c0_18, %c0_19, %c0_20] : memref<4x8x128xf32, #tpu.memory_space<vmem>>, vector<1x8x128xf32>
    %43 = vector.shape_cast %42 : vector<1x8x128xf32> to vector<8x128xf32>
    %44 = vector.shape_cast %41 : vector<8x128xf32> to vector<1x8x128xf32>
    tpu.vector_store %arg5[%c0_18, %c0_19, %c0_20], %44 {strides = array<i32>} : memref<4x8x128xf32, #tpu.memory_space<vmem>>, vector<1x8x128xf32>,
    %c1 = arith.constant 1 : index
    %c0_21 = arith.constant 0 : index
    %c0_22 = arith.constant 0 : index
    %45 = vector.load %arg5[%c1, %c0_21, %c0_22] : memref<4x8x128xf32, #tpu.memory_space<vmem>>, vector<1x8x128xf32>
    %46 = vector.shape_cast %45 : vector<1x8x128xf32> to vector<8x128xf32>
    %47 = vector.shape_cast %35 : vector<16x128xf32> to vector<2x8x128xf32>
    %cst_23 = arith.constant dense<0.000000e+00> : vector<8x128xf32>
    %48 = vector.multi_reduction <add>, %47, %cst_23 [0] : vector<2x8x128xf32> to vector<8x128xf32>
    %49 = arith.addf %46, %48 : vector<8x128xf32>
    %c1_24 = arith.constant 1 : index
    %c0_25 = arith.constant 0 : index
    %c0_26 = arith.constant 0 : index
    %50 = vector.load %arg5[%c1_24, %c0_25, %c0_26] : memref<4x8x128xf32, #tpu.memory_space<vmem>>, vector<1x8x128xf32>
    %51 = vector.shape_cast %50 : vector<1x8x128xf32> to vector<8x128xf32>
    %52 = vector.shape_cast %49 : vector<8x128xf32> to vector<1x8x128xf32>
    tpu.vector_store %arg5[%c1_24, %c0_25, %c0_26], %52 {strides = array<i32>} : memref<4x8x128xf32, #tpu.memory_space<vmem>>, vector<1x8x128xf32>,
    %c2 = arith.constant 2 : index
    %c0_27 = arith.constant 0 : index
    %c0_28 = arith.constant 0 : index
    %53 = vector.load %arg5[%c2, %c0_27, %c0_28] : memref<4x8x128xf32, #tpu.memory_space<vmem>>, vector<1x8x128xf32>
    %54 = vector.shape_cast %53 : vector<1x8x128xf32> to vector<8x128xf32>
    %55 = vector.shape_cast %4 : vector<16x128xf32> to vector<2x8x128xf32>
    %cst_29 = arith.constant dense<0.000000e+00> : vector<8x128xf32>
    %56 = vector.multi_reduction <add>, %55, %cst_29 [0] : vector<2x8x128xf32> to vector<8x128xf32>
    %57 = arith.addf %54, %56 : vector<8x128xf32>
    %c2_30 = arith.constant 2 : index
    %c0_31 = arith.constant 0 : index
    %c0_32 = arith.constant 0 : index
    %58 = vector.load %arg5[%c2_30, %c0_31, %c0_32] : memref<4x8x128xf32, #tpu.memory_space<vmem>>, vector<1x8x128xf32>
    %59 = vector.shape_cast %58 : vector<1x8x128xf32> to vector<8x128xf32>
    %60 = vector.shape_cast %57 : vector<8x128xf32> to vector<1x8x128xf32>
    tpu.vector_store %arg5[%c2_30, %c0_31, %c0_32], %60 {strides = array<i32>} : memref<4x8x128xf32, #tpu.memory_space<vmem>>, vector<1x8x128xf32>,
    %c3 = arith.constant 3 : index
    %c0_33 = arith.constant 0 : index
    %c0_34 = arith.constant 0 : index
    %61 = vector.load %arg5[%c3, %c0_33, %c0_34] : memref<4x8x128xf32, #tpu.memory_space<vmem>>, vector<1x8x128xf32>
    %62 = vector.shape_cast %61 : vector<1x8x128xf32> to vector<8x128xf32>
    %63 = vector.shape_cast %28 : vector<16x128xf32> to vector<2x8x128xf32>
    %cst_35 = arith.constant dense<0.000000e+00> : vector<8x128xf32>
    %64 = vector.multi_reduction <add>, %63, %cst_35 [0] : vector<2x8x128xf32> to vector<8x128xf32>
    %65 = arith.addf %62, %64 : vector<8x128xf32>
    %c3_36 = arith.constant 3 : index
    %c0_37 = arith.constant 0 : index
    %c0_38 = arith.constant 0 : index
    %66 = vector.load %arg5[%c3_36, %c0_37, %c0_38] : memref<4x8x128xf32, #tpu.memory_space<vmem>>, vector<1x8x128xf32>
    %67 = vector.shape_cast %66 : vector<1x8x128xf32> to vector<8x128xf32>
    %68 = vector.shape_cast %65 : vector<8x128xf32> to vector<1x8x128xf32>
    tpu.vector_store %arg5[%c3_36, %c0_37, %c0_38], %68 {strides = array<i32>} : memref<4x8x128xf32, #tpu.memory_space<vmem>>, vector<1x8x128xf32>,
    %c0_i32_39 = arith.constant 0 : i32
    %69 = arith.cmpi eq, %arg1, %c0_i32_39 : i32
    %70 = arith.extui %69 : i1 to i32
    %c0_i32_40 = arith.constant 0 : i32
    %71 = arith.cmpi ne, %70, %c0_i32_40 : i32
    scf.if %71 {
      %c0_41 = arith.constant 0 : index
      %c0_42 = arith.constant 0 : index
      %c0_43 = arith.constant 0 : index
      %72 = vector.load %arg5[%c0_41, %c0_42, %c0_43] : memref<4x8x128xf32, #tpu.memory_space<vmem>>, vector<4x8x128xf32>
      %c0_44 = arith.constant 0 : index
      %c0_45 = arith.constant 0 : index
      %c0_46 = arith.constant 0 : index
      %c0_47 = arith.constant 0 : index
      %73 = vector.load %arg4[%c0_44, %c0_45, %c0_46, %c0_47] : memref<1x4x8x128xf32, #tpu.memory_space<vmem>>, vector<1x4x8x128xf32>
      %74 = vector.shape_cast %73 : vector<1x4x8x128xf32> to vector<4x8x128xf32>
      %75 = vector.shape_cast %72 : vector<4x8x128xf32> to vector<1x4x8x128xf32>
      tpu.vector_store %arg4[%c0_44, %c0_45, %c0_46, %c0_47], %75 {strides = array<i32>} : memref<1x4x8x128xf32, #tpu.memory_space<vmem>>, vector<1x4x8x128xf32>,
    } else {
    }
    return
  }
  func.func @transform_0(%arg0: i32, %arg1: i32) -> (i32, i32) {
    %c1_i32 = arith.constant 1 : i32
    %0 = arith.muli %arg0, %c1_i32 : i32
    %1 = arith.addi %0, %arg1 : i32
    %c0_i32 = arith.constant 0 : i32
    %c0_i32_0 = arith.constant 0 : i32
    return %1, %c0_i32 : i32, i32
  }
  func.func @transform_1(%arg0: i32, %arg1: i32) -> (i32, i32) {
    %c1_i32 = arith.constant 1 : i32
    %0 = arith.muli %arg0, %c1_i32 : i32
    %1 = arith.addi %0, %arg1 : i32
    %c0_i32 = arith.constant 0 : i32
    %c0_i32_0 = arith.constant 0 : i32
    return %1, %c0_i32 : i32, i32
  }
  func.func @transform_2(%arg0: i32, %arg1: i32) -> (i32, i32, i32, i32) {
    %c0_i32 = arith.constant 0 : i32
    %c0_i32_0 = arith.constant 0 : i32
    %c0_i32_1 = arith.constant 0 : i32
    %c0_i32_2 = arith.constant 0 : i32
    return %arg0, %c0_i32, %c0_i32_0, %c0_i32_1 : i32, i32, i32, i32
  }
}

</mosaic_0001>

<bundles_post_ra>
// kernel: tpu_custom_call.1
= control target key start
LH: loop header
LB: loop body
LE: loop exit
PB: predicated region body
PF: predicated region fallthrough
CT: control target
= control target key end

     0   :  { %7 = vsyncpa [#allocation4], 0  ;;  %s979_s0 = inlined_call_operand.hbm [shape: f32[32,128], index: 0, kind: input, shape index: {}]   ;;  %s980_s1 = inlined_call_operand.hbm [shape: f32[32,128], index: 1, kind: input, shape index: {}]   ;;  %s981_s2 = inlined_call_operand.hbm [shape: f32[2,4,8,128], index: 2, kind: output, shape index: {}]  }
   0x1   :  { %9 = vsyncpa [#allocation4 + $0x1], 0 }
   0x2   :  { %10 = vsyncpa [#allocation7], 0 }
   0x3   :  { %12 = vsyncpa [#allocation7 + $0x1], 0 }
   0x4   :  { %13 = vsyncpa [#allocation5], 0 }
   0x5   :  { %15 = vsyncpa [#allocation5 + $0x1], 0  ;;  %s723_s9 = smov 0   ;;  %s725_s10 = smov 0  }
   0x6   :  { %s727_s11 = smov 0   ;;  %s729_s12 = smov 0  }
   0x7   :  { %s731_s13 = smov 0   ;;  %s733_s14 = smov 0  }
   0x8 LB: > { %s448_s15 = sadd.s32 4294967295, %s699_s14   ;;  %s449_s16 = sadd.s32 4294967294, %s699_s14   ;;  %s699_s14 = sphi %s733_s14, %s21_s14   ;;  %s695_s13 = sphi %s731_s13, %s999_s13   ;;  %s691_s12 = sphi %s729_s12, %s998_s12   ;;  %s687_s11 = sphi %s727_s11, %s997_s11   ;;  %s683_s10 = sphi %s725_s10, %s996_s10   ;;  %s679_s9 = sphi %s723_s9, %s995_s9  }
   0x9   : > { %s33_s17 = sadd.s32 1, %s695_s13  ;;  %s42_s18 = sadd.s32 1, %s687_s11 }
   0xa   : > { %p35_p0 = scmp.ge.s32.totalorder %s33_s17, 2  ;;  %p49_p1 = scmp.ne.s32.totalorder %s687_s11, %s683_s10 }
   0xb   : > { %p50_p2 = scmp.eq.s32.totalorder %s699_s14, 0  ;;  %p55_p3 = scmp.ne.s32.totalorder %s683_s10, %s679_s9 }
   0xc   : > { %s1001_s17 = smov (%p35_p0, %s33_s17), 0  ;;  %p56_p5 = scmp.eq.s32.totalorder %s448_s15, 0 }
   0xd   : > { %p764_p4 = por %p50_p2, %p49_p1  ;;  %s39_s20 = ssub.s32 %s695_s13, %s1001_s17 }
   0xe   : > { %p107_p6 = scmp.eq.s32.totalorder %s448_s15, 1  ;;  %p40_p7 = scmp.eq.s32.totalorder %s39_s20, 0 }
   0xf   : > { %p770_p8 = por %p56_p5, %p55_p3  ;;  %p113_p10 = scmp.eq.s32.totalorder %s449_s16, 1 }
  0x10   : > { %p774_p9 = por %p107_p6, %p49_p1  ;;  %p487_p13 = scmp.lt.s32.totalorder %s699_s14, 2 }
  0x11   : > { %s985_s21 = scalar_select %p770_p8, 1, 0 }
  0x12   : > { %s986_s22 = scalar_select %p774_p9, 1, 0 }
  0x13   : > { %s779_s23 = scalar_select %p40_p7, %s687_s11, %s42_s18  }
  0x14   : > { %p781_p11 = por %p113_p10, %p55_p3  ;;  %s788_s25 = sand.u32 1, %s687_s11  }
  0x15   : > { %s452_s26 = sshll.u32 %s788_s25, 4  ;;  %s467_s27 = sshll.u32 %s695_s13, 8 }
  0x16   : > { %s987_s24 = scalar_select %p781_p11, 1, 0 }
  0x17   : > { %s797_s30 = scalar_lea.hbm %s979_s0, %s467_s27  ;;  %s137_s3 = scalar_lea.vmem [#allocation3], %s452_s26 }
  0x18   : > { %s145_s4 = sshll.u32 %s137_s3, 4  ;;  %p805_p0 = pnand %p487_p13, %p764_p4  ;;  %s801_s4 = int_to_ptr.vmem [resolvable:$true] %s145_s4 }
  0x19   : > { %s134_s6 = scalar_lea.sflag [#allocation4], %s788_s25  ;;  %s553_s7 = scalar_lea.hbm %s797_s30, 256 }
  0x1a   : > { %p554_p2 = scmp.ne.s32.totalorder %s797_s30, %s553_s7  ;;  %p555_p3 = pneg %p805_p0 }
  0x1b   : > { %s558_s16 = scalar_lea.hbm %s979_s0, 512  ;;  %p559_p4 = scmp.lt.u32.totalorder %s797_s30, %s979_s0 }
  0x1c   : > { %p556_p5 = pnand %p555_p3, %p554_p2  ;;  %p560_p7 = scmp.lt.u32.totalorder %s558_s16, %s553_s7 }
  0x1d   : > { %p562_p13 = scmp.lt.u32.totalorder %s553_s7, %s797_s30 }
  0x1e   : > { %p557_p6 = pneg %p556_p5  ;;  %p561_p10 = por %p560_p7, %p559_p4 }
  0x20   : > { %p563_p12 = por %p562_p13, %p561_p10 }
  0x22   : > { %p564_p1 = pnand %p563_p12, %p557_p6 }
  0x24   : > { %567 = shalt.err (!%p564_p1)
}
  0x25   : > { %s568_s20 = scalar_lea.vmem %s801_s4, 256  ;;  %s701_s28 = smov [#allocation3]  }
  0x26   : > { %p569_p2 = scmp.ne.s32.totalorder %s801_s4, %s568_s20  ;;  %s573_s29 = sshll.u32 %s701_s28, 4  ;;  %s574_s29 = int_to_ptr.vmem [resolvable:$false] %s573_s29 }
  0x27   : > { %s575_s3 = scalar_lea.vmem %s574_s29, 512  ;;  %p576_p9 = scmp.lt.s32.totalorder %s801_s4, %s574_s29 }
  0x28   : > { %p571_p5 = pnand %p569_p2, %p555_p3  ;;  %p577_p4 = scmp.lt.s32.totalorder %s575_s3, %s568_s20 }
  0x2a   : > { %p572_p11 = pneg %p571_p5  ;;  %p578_p7 = por %p577_p4, %p576_p9 }
  0x2c   : > { %p579_p10 = pnand %p578_p7, %p572_p11 }
  0x2e   : > { %582 = shalt.err (!%p579_p10)
}
  0x2f   : > { %s702_s7 = smov 128   ;;  %s703_s8 = smov 8  }
  0x30   : > { %479 = dma.hbm_to_vmem [thread:$0]  (!%p805_p0), %s797_s30, 256, %s801_s4, %s134_s6, %s702_s7, %s702_s7, %s703_s8  }
  0x31   : > { %p175_p9 = scmp.lt.s32.totalorder %s699_s14, 3  ;;  %s847_s18 = scalar_lea.hbm %s980_s1, %s467_s27 }
  0x32   : > { %p989_p11 = scmp.ge.s32.totalorder %s699_s14, 1  ;;  %s159_s20 = scalar_lea.vmem [#allocation6], %s452_s26 }
  0x33   : > { %s167_s28 = sshll.u32 %s159_s20, 4  ;;  %s156_s30 = scalar_lea.sflag [#allocation7], %s788_s25  ;;  %s857_s28 = int_to_ptr.vmem [resolvable:$true] %s167_s28 }
  0x34   : > { %p851_p12 = pnand %p989_p11, %p175_p9  ;;  %s583_s4 = scalar_lea.hbm %s847_s18, 256 }
  0x35   : > { %p584_p1 = scmp.ne.s32.totalorder %s847_s18, %s583_s4  ;;  %s588_s29 = scalar_lea.hbm %s980_s1, 512 }
  0x36   : > { %p589_p2 = scmp.lt.u32.totalorder %s847_s18, %s980_s1  ;;  %p590_p5 = scmp.lt.u32.totalorder %s588_s29, %s583_s4 }
  0x37   : > { %p586_p6 = pnand %p584_p1, %p555_p3  ;;  %p592_p7 = scmp.lt.u32.totalorder %s583_s4, %s847_s18 }
  0x38   : > { %p591_p4 = por %p590_p5, %p589_p2 }
  0x39   : > { %p587_p13 = pneg %p586_p6 }
  0x3a   : > { %p593_p10 = por %p592_p7, %p591_p4 }
  0x3c   : > { %p594_p9 = pnand %p593_p10, %p587_p13 }
  0x3e   : > { %597 = shalt.err (!%p594_p9)
}
  0x3f   : > { %s598_s26 = scalar_lea.vmem %s857_s28, 256  ;;  %s704_s16 = smov [#allocation6]  }
  0x40   : > { %p599_p11 = scmp.ne.s32.totalorder %s857_s28, %s598_s26  ;;  %s603_s20 = sshll.u32 %s704_s16, 4  ;;  %s604_s20 = int_to_ptr.vmem [resolvable:$false] %s603_s20 }
  0x41   : > { %s605_s27 = scalar_lea.vmem %s604_s20, 512  ;;  %p606_p8 = scmp.lt.s32.totalorder %s857_s28, %s604_s20 }
  0x42   : > { %p601_p1 = pnand %p599_p11, %p555_p3  ;;  %p607_p2 = scmp.lt.s32.totalorder %s605_s27, %s598_s26 }
  0x44   : > { %p602_p6 = pneg %p601_p1  ;;  %p608_p5 = por %p607_p2, %p606_p8 }
  0x46   : > { %p609_p4 = pnand %p608_p5, %p602_p6 }
  0x48   : > { %612 = shalt.err (!%p609_p4)
}
  0x49   : > { %482 = dma.hbm_to_vmem [thread:$0]  (!%p805_p0), %s847_s18, 256, %s857_s28, %s156_s30, %s702_s7, %s702_s7, %s703_s8  }
  0x4a   : > { %179 = sbr.rel (%p851_p12) target bundleno = 148 (0x94), region = 28  ;;  %s891_s4 = sand.u32 (!%p851_p12), 1, %s683_s10  }
  0x4b   : > { %s459_s6 = sshll.u32 (!%p851_p12), %s891_s4, 4  ;;  %s182_s29 = scalar_lea.sflag (!%p851_p12), [#allocation4], %s891_s4 }
  0x4c   : > { %s185_s5 = scalar_lea.vmem (!%p851_p12), [#allocation3], %s459_s6  ;;  %p991_p8 = scmp.ne.s32.totalorder (!%p851_p12), %s985_s21, 0 }
  0x51   : > { %666 = dma.done.wait (%p991_p8), %s182_s29, 256  }
  0x52   : > { %668 = vsyncadd (%p991_p8), %s182_s29, 4294967040  ;;  %s191_s25 = scalar_lea.sflag [#allocation7], %s891_s4  ;;  %s194_s7 = scalar_lea.vmem [#allocation6], %s459_s6 }
  0x53   : > { %670 = dma.done.wait (%p991_p8), %s191_s25, 256  }
  0x54   : > { %672 = vsyncadd (%p991_p8), %s191_s25, 4294967040  ;;  %s461_s8 = sshll.u32 %s891_s4, 5  ;;  %v232_v0 = vld [vmem:[%s185_s5] sm:$0xff]  ;;  %v233_v1 = vld [vmem:[%s185_s5 + $0x8] sm:$0xff]  ;;  %s469_s19 = sshll.u32 %s691_s12, 9 }
  0x55   : > { %v905_v2 = vld [vmem:[%s194_s7] sm:$0xff]  ;;  %v907_v3 = vld [vmem:[%s194_s7 + $0x8] sm:$0xff]  ;;  %v236_v4 = vand.u32 2147483647, %v232_v0  ;;  %v237_v5 = vand.u32 2147483647, %v233_v1  ;;  %s929_s3 = scalar_lea.hbm %s981_s2, %s469_s19 }
  0x56   : > { %v309_v6 = vadd.f32 %v907_v3, %v905_v2  ;;  %s911_s18 = scalar_lea.vmem [#allocation8], %s461_s8  ;;  %vm286_vm0 = vcmp.ge.f32.partialorder %v232_v0, 0.0  ;;  %vm287_vm1 = vcmp.ge.f32.partialorder %v233_v1, 0.0  ;;  %v266_v21 = vsub.f32 0.0, %v232_v0  ;;  %s329_s15 = scalar_lea.sflag [#allocation5], %s891_s4 }
  0x57   : > { %v238_v7 = vsub.f32 0.0, %v236_v4  ;;  %v239_v8 = vsub.f32 0.0, %v237_v5  ;;  %v267_v24 = vsub.f32 0.0, %v233_v1  ;;  %v262_v29 = vmin.f32 %v232_v0, 0.0  ;;  %s342_s21 = sshll.u32 %s911_s18, 4  ;;  %p992_p3 = scmp.ne.s32.totalorder %s986_s22, 0  ;;  %s924_s21 = int_to_ptr.vmem [resolvable:$true] %s342_s21 }
  0x58   : > { %326 = vst [vmem:[%s911_s18 + $0x10] sm:$0xff] %v309_v6  ;;  %v263_v30 = vmin.f32 %v233_v1, 0.0  ;;  %v268_v34 = vmin.f32 %v266_v21, 0.0  ;;  %v278_v43 = vsub.f32 1.0, %v905_v2  ;;  %v279_v50 = vsub.f32 1.0, %v907_v3  ;;  %s613_s26 = scalar_lea.vmem %s924_s21, 512 }
  0x59   : > { %v240_v9 = vmul.f32 1.442695, %v238_v7  ;;  %v242_v10 = vmul.f32 1.442695, %v239_v8  ;;  %v269_v38 = vmin.f32 %v267_v24, 0.0  ;;  %p614_p0 = scmp.ne.s32.totalorder %s924_s21, %s613_s26  ;;  %s705_s12 = smov [#allocation8]  }
  0x5a   : > { %s617_s16 = sshll.u32 %s705_s12, 4  ;;  %s618_s16 = int_to_ptr.vmem [resolvable:$false] %s617_s16 }
  0x5b   : > { %541 = vpow2.f32 %v240_v9  ;;  %p615_p12 = pnand %p614_p0, %p992_p3  ;;  %s619_s20 = scalar_lea.vmem %s618_s16, 1024 }
  0x5c   : > { %543 = vpow2.f32 %v242_v10  ;;  %p620_p7 = scmp.lt.s32.totalorder %s924_s21, %s618_s16  ;;  %p621_p10 = scmp.lt.s32.totalorder %s619_s20, %s613_s26 }
  0x5d   : > { %p616_p13 = pneg %p615_p12 }
  0x5e   : > { %p622_p9 = por %p621_p10, %p620_p7 }
  0x60   : > { %p623_p11 = pnand %p622_p9, %p616_p13 }
  0x65   : > { %v542_v11 = vpop.eup %541 }
  0x66   : > { %v544_v12 = vpop.eup %543  ;;  %v244_v13 = vadd.f32 1.0, %v542_v11  ;;  %v247_v15 = vmul.f32 -0.5, %v542_v11  ;;  %v288_v18 = vsel %vm286_vm0, 1.0, %v542_v11  ;;  %v250_v19 = vand.u32 2147483647, %v542_v11 }
  0x67   : > { %v253_v14 = vadd.f32 1.0, %v544_v12  ;;  %v256_v16 = vmul.f32 -0.5, %v544_v12  ;;  %v289_v22 = vsel %vm287_vm1, 1.0, %v544_v12  ;;  %v259_v23 = vand.u32 2147483647, %v544_v12 }
  0x68   : > { %545 = vrcp.f32 %v244_v13  ;;  %v248_v17 = vadd.f32 1.0, %v247_v15  ;;  %vm251_vm2 = vcmp.lt.f32.partialorder %v250_v19, 0.0004427343 }
  0x69   : > { %547 = vrcp.f32 %v253_v14  ;;  %v257_v20 = vadd.f32 1.0, %v256_v16  ;;  %vm260_vm3 = vcmp.lt.f32.partialorder %v259_v23, 0.0004427343 }
  0x6a   : > { %549 = vlog2.f32 %v244_v13  ;;  %v249_v28 = vmul.f32 %v542_v11, %v248_v17 }
  0x6b   : > { %551 = vlog2.f32 %v253_v14  ;;  %v258_v33 = vmul.f32 %v544_v12, %v257_v20 }
  0x72   : > { %v546_v25 = vpop.eup %545 }
  0x73   : > { %v548_v26 = vpop.eup %547  ;;  %v293_v27 = vmul.f32 %v546_v25, %v288_v18 }
  0x74   : > { %v550_v31 = vpop.eup %549  ;;  %v295_v32 = vmul.f32 %v548_v26, %v289_v22 }
  0x75   : > { %v552_v35 = vpop.eup %551  ;;  %v297_v36 = vmul.f32 %v293_v27, %v905_v2  ;;  %v246_v37 = vmul.f32 0.6931472, %v550_v31 }
  0x76   : > { %v298_v39 = vmul.f32 %v295_v32, %v907_v3  ;;  %v304_v40 = vadd.f32 %v295_v32, %v293_v27  ;;  %v255_v41 = vmul.f32 0.6931472, %v552_v35 }
  0x77   : > { %v252_v42 = vsel %vm251_vm2, %v249_v28, %v246_v37 }
  0x78   : > { %v299_v44 = vadd.f32 %v298_v39, %v297_v36  ;;  %325 = vst [vmem:[%s911_s18 + $0x8] sm:$0xff] %v304_v40  ;;  %v261_v45 = vsel %vm260_vm3, %v258_v33, %v255_v41  ;;  %v264_v46 = vsub.f32 %v262_v29, %v252_v42  ;;  %v270_v47 = vsub.f32 %v268_v34, %v252_v42 }
  0x79   : > { %v265_v48 = vsub.f32 %v263_v30, %v261_v45  ;;  %v271_v49 = vsub.f32 %v269_v38, %v261_v45 }
  0x7a   : > { %324 = vst [vmem:[%s911_s18] sm:$0xff] %v299_v44  ;;  %v272_v51 = vmax.f32 %v264_v46, -100.0  ;;  %v274_v52 = vmax.f32 %v270_v47, -100.0 }
  0x7b   : > { %v273_v53 = vmax.f32 %v265_v48, -100.0  ;;  %v275_v54 = vmax.f32 %v271_v49, -100.0 }
  0x7c   : > { %v276_v55 = vmul.f32 %v272_v51, %v905_v2  ;;  %v280_v56 = vmul.f32 %v278_v43, %v274_v52 }
  0x7d   : > { %v277_v57 = vmul.f32 %v273_v53, %v907_v3  ;;  %v281_v58 = vmul.f32 %v279_v50, %v275_v54 }
  0x7e   : > { %v282_v59 = vadd.f32 %v280_v56, %v276_v55 }
  0x7f   : > { %v283_v60 = vadd.f32 %v281_v58, %v277_v57 }
  0x80   : > { %v284_v61 = vsub.f32 0.0, %v282_v59 }
  0x81   : > { %v285_v62 = vsub.f32 0.0, %v283_v60 }
  0x83   : > { %v314_v63 = vadd.f32 %v285_v62, %v284_v61 }
  0x85   : > { %327 = vst [vmem:[%s911_s18 + $0x18] sm:$0xff] %v314_v63 }
  0x86   : > { %626 = shalt.err (!%p623_p11)
}
  0x87   : > { %s627_s27 = scalar_lea.hbm %s929_s3, 512  ;;  %s631_s5 = scalar_lea.hbm %s981_s2, 1024 }
  0x88   : > { %p628_p1 = scmp.ne.s32.totalorder %s929_s3, %s627_s27  ;;  %p632_p5 = scmp.lt.u32.totalorder %s929_s3, %s981_s2 }
  0x89   : > { %p633_p4 = scmp.lt.u32.totalorder %s631_s5, %s627_s27  ;;  %p635_p0 = scmp.lt.u32.totalorder %s627_s27, %s929_s3 }
  0x8a   : > { %p629_p6 = pnand %p628_p1, %p992_p3 }
  0x8b   : > { %p634_p8 = por %p633_p4, %p632_p5 }
  0x8c   : > { %p630_p2 = pneg %p629_p6 }
  0x8d   : > { %p636_p12 = por %p635_p0, %p634_p8 }
  0x8f   : > { %p637_p13 = pnand %p636_p12, %p630_p2 }
  0x91   : > { %640 = shalt.err (!%p637_p13)
}
  0x92   : > { %s706_s8 = smov 128   ;;  %s707_s18 = smov 8  }
  0x93   : > { %474 = dma.vmem_to_hbm [thread:$0]  (%p992_p3), %s924_s21, 512, %s929_s3, %s329_s15, %s706_s8, %s706_s8, %s707_s18  }
  0x94 PF: > { %s357_s19 = sand.u32 1, %s679_s9   ;;  %p993_p7 = scmp.ne.s32.totalorder %s987_s24, 0 }
  0x95   : > { %p994_p10 = scmp.ge.s32.totalorder %s699_s14, 2  ;;  %s358_s28 = scalar_lea.sflag [#allocation5], %s357_s19 }
  0x97   : > { %p484_p9 = pnand %p994_p10, %p993_p7 }
  0x99   : > { %674 = dma.done.wait (!%p484_p9), %s358_s28, 512  }
  0x9a   : > { %676 = vsyncadd (!%p484_p9), %s358_s28, 4294966784  ;;  %s21_s14 = sadd.s32 1, %s699_s14   ;;  %s995_s9 = smov %s683_s10 }
  0x9b   : > { %p18_p11 = scmp.ge.s32.totalorder %s21_s14, 4   ;;  %s996_s10 = smov %s687_s11 }
  0x9c   : > { %s997_s11 = smov %s779_s23  ;;  %s998_s12 = smov %s695_s13 }
  0x9d   : > { %s999_s13 = smov %s1001_s17  ;;  %20 = sbr.rel (!%p18_p11) target bundleno = 8 (0x8), region = 97 }
  0xa4   :  { %363 = vsyncpa [#allocation4], 1 }
  0xa5   :  { %365 = vsyncpa [#allocation4 + $0x1], 1 }
  0xa6   :  { %366 = vsyncpa [#allocation7], 1 }
  0xa7   :  { %368 = vsyncpa [#allocation7 + $0x1], 1 }
  0xa8   :  { %369 = vsyncpa [#allocation5], 1 }
  0xa9   :  { %371 = vsyncpa [#allocation5 + $0x1], 1 }

</bundles_post_ra>
